<compile_context>
chip_gen: v5e
topology: v5e:2x2
jax: 0.10.0
libtpu: 0.0.40
codegen_flags: <defaults>
</compile_context>

<pallas_src>
import functools

import jax
import jax.numpy as jnp
from jax import lax
from jax.experimental import pallas as pl
from jax.experimental.pallas import tpu as pltpu

LANES = 128
NUM_CORES = 2                          # v7x has 2 TCs; serial (harmless) on v5e/v6e
TARGET_BLOCK_BYTES = 4 * 1024 * 1024   # per-input block; 2 inputs x 2 bufs = 16 MiB
VMEM_LIMIT_BYTES = 32 * 1024 * 1024    # fits v5e/v6e (128 MiB) and v7x (64 MiB) VMEM


def _round_up(x, m):
    return (x + m - 1) // m * m


def _sum_sq_kernel(p_ref, l_ref, out_ref, acc_ref, *, tm, rows_total,
                   steps_per_core):
    c = pl.program_id(0)               # TensorCore-parallel axis
    i = pl.program_id(1)               # streaming (reduction) axis
    nsteps = pl.num_programs(1)

    @pl.when(i == 0)
    def _():
        acc_ref[...] = jnp.zeros_like(acc_ref)

    d = p_ref[...].astype(jnp.float32) - l_ref[...].astype(jnp.float32)
    sq = d * d

    # Rows of the (rows_total, 128) slab covered by this logical block.  The
    # input index_map is clamped, so blocks with valid <= 0 simply re-read an
    # in-bounds window whose data we never accumulate.
    start = (c * steps_per_core + i) * tm
    valid = rows_total - start

    @pl.when(valid >= tm)              # steady state: mask-free VPU accumulate
    def _():
        acc_ref[...] += jnp.sum(sq.reshape(tm // 8, 8, LANES), axis=0)

    @pl.when(jnp.logical_and(valid > 0, valid < tm))   # ragged boundary block
    def _():
        row_ids = lax.broadcasted_iota(jnp.int32, (tm, LANES), 0)
        masked = jnp.where(row_ids < valid, sq, 0.0)
        acc_ref[...] += jnp.sum(masked.reshape(tm // 8, 8, LANES), axis=0)

    @pl.when(i == nsteps - 1)
    def _():
        out_ref[...] = acc_ref[...]    # per-core (8, 128) lane partial sums


def _sum_sq_pallas(p2d, l2d, block_bytes):
    """Sum of squared differences over a (rows, 128) slab (f32 result)."""
    rows, lanes = p2d.shape
    assert lanes == LANES
    itemsize = jnp.dtype(p2d.dtype).itemsize
    # Native sublane packing: f32 -> 8, bf16/f16 -> 16, int8/fp8 -> 32.
    sublane = {4: 8, 2: 16, 1: 32}.get(itemsize, 8)

    # Byte-budget tile (per-input VMEM block), rounded to the packing granule.
    tm = max(sublane, (block_bytes // (LANES * itemsize)) // sublane * sublane)
    tm = min(tm, _round_up(rows, sublane))

    grid_n = pl.cdiv(rows, tm)             # blocks that contain valid rows
    steps = pl.cdiv(grid_n, NUM_CORES)     # blocks per TensorCore
    last_block = grid_n - 1

    def in_map(c, i):
        # Clamp so the (at most one) surplus block of the final core re-reads an
        # in-bounds window instead of issuing an out-of-range DMA.
        return (jnp.minimum(c * steps + i, last_block), 0)

    kernel = functools.partial(_sum_sq_kernel, tm=tm, rows_total=rows,
                               steps_per_core=steps)

    out = pl.pallas_call(
        kernel,
        out_shape=jax.ShapeDtypeStruct((NUM_CORES * 8, LANES), jnp.float32),
        grid_spec=pltpu.PrefetchScalarGridSpec(
            num_scalar_prefetch=0,
            grid=(NUM_CORES, steps),
            in_specs=[pl.BlockSpec((tm, LANES), in_map),
                      pl.BlockSpec((tm, LANES), in_map)],
            out_specs=pl.BlockSpec((8, LANES), lambda c, i: (c, 0)),
            scratch_shapes=[pltpu.VMEM((8, LANES), jnp.float32)],
        ),
        compiler_params=pltpu.CompilerParams(
            dimension_semantics=("parallel", "arbitrary"),
            vmem_limit_bytes=VMEM_LIMIT_BYTES,
        ),
        cost_estimate=pl.CostEstimate(
            flops=3 * rows * LANES,
            transcendentals=0,
            bytes_accessed=2 * rows * LANES * itemsize + NUM_CORES * 8 * LANES * 4,
        ),
    )(p2d, l2d)
    # (2*8, 128) per-core lane partials -> scalar: 2 KiB, trivial in the wrapper.
    return jnp.sum(out)


def euclidian_loss(per, label, *, block_bytes=TARGET_BLOCK_BYTES):
    """Pallas equivalent of Euclidian_loss.forward: mean((per - label) ** 2)."""
    assert per.shape == label.shape, "per and label must have the same shape"
    assert per.dtype == label.dtype, "per and label must have the same dtype"
    n = per.size
    assert n > 0, "empty input"

    flat_p = per.reshape(-1)       # contiguous reshape: free bitcast, no copy
    flat_l = label.reshape(-1)

    rows = n // LANES              # full 128-lane rows handled by the kernel
    bulk = rows * LANES
    rem = n - bulk                 # < 128 trailing elements

    total = jnp.zeros((), jnp.float32)
    if rows > 0:
        if rem:
            # TODO(synk): when n % 128 != 0 the bulk slice still materialises a
            # copy (XLA can't alias a sub-buffer into the custom call); a
            # manual-DMA (memory_space=pl.ANY) variant would remove it.
            bp, bl = flat_p[:bulk], flat_l[:bulk]
        else:
            bp, bl = flat_p, flat_l          # zero-copy path (common case)
        total = total + _sum_sq_pallas(bp.reshape(rows, LANES),
                                       bl.reshape(rows, LANES), block_bytes)
    if rem:
        tp = flat_p[bulk:].astype(jnp.float32)
        tl = flat_l[bulk:].astype(jnp.float32)
        total = total + jnp.sum((tp - tl) ** 2)

    return total / jnp.float32(n)


if __name__ == "__main__":
    key = jax.random.PRNGKey(0)
    k1, k2, k3, k4, k5, k6 = jax.random.split(key, 6)

    # 1) Small NCHW-like input: n % 128 == 0 -> zero-copy, single-block path.
    per1 = jax.random.normal(k1, (2, 4, 16, 16), dtype=jnp.float32)
    lab1 = jax.random.normal(k2, (2, 4, 16, 16), dtype=jnp.float32)
    out1 = jax.block_until_ready(euclidian_loss(per1, lab1))
    ref1 = jnp.mean((per1 - lab1) ** 2)
    assert jnp.allclose(out1, ref1, rtol=1e-6, atol=1e-6), (out1, ref1)

    # 2) Awkward shape: n = 1155 -> 9 ragged rows (in-kernel row mask) plus a
    #    3-element wrapper tail.
    per2 = jax.random.normal(k3, (3, 5, 7, 11), dtype=jnp.float32)
    lab2 = jax.random.normal(k4, (3, 5, 7, 11), dtype=jnp.float32)
    out2 = jax.block_until_ready(euclidian_loss(per2, lab2))
    ref2 = jnp.mean((per2 - lab2) ** 2)
    assert jnp.allclose(out2, ref2, rtol=1e-6, atol=1e-6), (out2, ref2)

    # 3) Multi-step pipeline + dual-core split + ragged last block + one clamped
    #    surplus block, exercised at small size by shrinking the block budget:
    #    2640 rows, tm = 128 -> grid (2, 11), last valid block has 80 rows.
    per3 = jax.random.normal(k5, (5, 4, 128, 132), dtype=jnp.float32)
    lab3 = jax.random.normal(k6, (5, 4, 128, 132), dtype=jnp.float32)
    out3 = jax.block_until_ready(euclidian_loss(per3, lab3, block_bytes=64 * 1024))
    ref3 = jnp.mean((per3 - lab3) ** 2)
    assert jnp.allclose(out3, ref3, rtol=1e-5, atol=1e-6), (out3, ref3)

    print("KERNEL_OK")
</pallas_src>

<mosaic_0001>
module attributes {stable_mosaic.version = 11 : i64} {
  func.func @_sum_sq_kernel(%arg0: i32, %arg1: i32, %arg2: memref<16x128xf32, #tpu.memory_space<vmem>>, %arg3: memref<16x128xf32, #tpu.memory_space<vmem>>, %arg4: memref<8x128xf32, #tpu.memory_space<vmem>>, %arg5: memref<8x128xf32, #tpu.memory_space<vmem>>) attributes {dimension_semantics = [#tpu.dimension_semantics<parallel>, #tpu.dimension_semantics<arbitrary>], iteration_bounds = array<i64: 2, 1>, scalar_prefetch = 0 : i64, scratch_operands = 1 : i64, tpu.core_type = #tpu.core_type<tc>, window_params = [{transform_indices = @transform_0, window_bounds = array<i64: 16, 128>}, {transform_indices = @transform_1, window_bounds = array<i64: 16, 128>}, {transform_indices = @transform_2, window_bounds = array<i64: 8, 128>}]} {
    %c0_i32 = arith.constant 0 : i32
    %0 = arith.cmpi eq, %arg1, %c0_i32 : i32
    %1 = arith.extui %0 : i1 to i32
    %c0_i32_0 = arith.constant 0 : i32
    %2 = arith.cmpi ne, %1, %c0_i32_0 : i32
    scf.if %2 {
      %cst = arith.constant 0.000000e+00 : f32
      %22 = vector.broadcast %cst : f32 to vector<8x128xf32>
      %c0_12 = arith.constant 0 : index
      %c0_13 = arith.constant 0 : index
      %23 = vector.load %arg5[%c0_12, %c0_13] : memref<8x128xf32, #tpu.memory_space<vmem>>, vector<8x128xf32>
      tpu.vector_store %arg5[%c0_12, %c0_13], %22 {strides = array<i32>} : memref<8x128xf32, #tpu.memory_space<vmem>>, vector<8x128xf32>,
    } else {
    }
    %c0 = arith.constant 0 : index
    %c0_1 = arith.constant 0 : index
    %3 = vector.load %arg2[%c0, %c0_1] : memref<16x128xf32, #tpu.memory_space<vmem>>, vector<16x128xf32>
    %c0_2 = arith.constant 0 : index
    %c0_3 = arith.constant 0 : index
    %4 = vector.load %arg3[%c0_2, %c0_3] : memref<16x128xf32, #tpu.memory_space<vmem>>, vector<16x128xf32>
    %5 = arith.subf %3, %4 : vector<16x128xf32>
    %6 = arith.mulf %5, %5 : vector<16x128xf32>
    %c1_i32 = arith.constant 1 : i32
    %7 = arith.muli %arg0, %c1_i32 : i32
    %8 = arith.addi %7, %arg1 : i32
    %c16_i32 = arith.constant 16 : i32
    %9 = arith.muli %8, %c16_i32 : i32
    %c16_i32_4 = arith.constant 16 : i32
    %10 = arith.subi %c16_i32_4, %9 : i32
    %c16_i32_5 = arith.constant 16 : i32
    %11 = arith.cmpi sge, %10, %c16_i32_5 : i32
    %12 = arith.extui %11 : i1 to i32
    %c0_i32_6 = arith.constant 0 : i32
    %13 = arith.cmpi ne, %12, %c0_i32_6 : i32
    scf.if %13 {
      %c0_12 = arith.constant 0 : index
      %c0_13 = arith.constant 0 : index
      %22 = vector.load %arg5[%c0_12, %c0_13] : memref<8x128xf32, #tpu.memory_space<vmem>>, vector<8x128xf32>
      %23 = vector.shape_cast %6 : vector<16x128xf32> to vector<2x8x128xf32>
      %cst = arith.constant dense<0.000000e+00> : vector<8x128xf32>
      %24 = vector.multi_reduction <add>, %23, %cst [0] : vector<2x8x128xf32> to vector<8x128xf32>
      %25 = arith.addf %22, %24 : vector<8x128xf32>
      %c0_14 = arith.constant 0 : index
      %c0_15 = arith.constant 0 : index
      %26 = vector.load %arg5[%c0_14, %c0_15] : memref<8x128xf32, #tpu.memory_space<vmem>>, vector<8x128xf32>
      tpu.vector_store %arg5[%c0_14, %c0_15], %25 {strides = array<i32>} : memref<8x128xf32, #tpu.memory_space<vmem>>, vector<8x128xf32>,
    } else {
    }
    %c0_i32_7 = arith.constant 0 : i32
    %14 = arith.cmpi sgt, %10, %c0_i32_7 : i32
    %c16_i32_8 = arith.constant 16 : i32
    %15 = arith.cmpi slt, %10, %c16_i32_8 : i32
    %16 = arith.andi %14, %15 : i1
    %17 = arith.extui %16 : i1 to i32
    %c0_i32_9 = arith.constant 0 : i32
    %18 = arith.cmpi ne, %17, %c0_i32_9 : i32
    scf.if %18 {
      %22 = tpu.iota {dimensions = array<i32: 0>} : vector<16x128xi32>
      %23 = vector.broadcast %10 : i32 to vector<16x128xi32>
      %24 = arith.cmpi slt, %22, %23 : vector<16x128xi32>
      %cst = arith.constant 0.000000e+00 : f32
      %25 = vector.broadcast %cst : f32 to vector<16x128xf32>
      %26 = arith.select %24, %6, %25 : vector<16x128xi1>, vector<16x128xf32>
      %c0_12 = arith.constant 0 : index
      %c0_13 = arith.constant 0 : index
      %27 = vector.load %arg5[%c0_12, %c0_13] : memref<8x128xf32, #tpu.memory_space<vmem>>, vector<8x128xf32>
      %28 = vector.shape_cast %26 : vector<16x128xf32> to vector<2x8x128xf32>
      %cst_14 = arith.constant dense<0.000000e+00> : vector<8x128xf32>
      %29 = vector.multi_reduction <add>, %28, %cst_14 [0] : vector<2x8x128xf32> to vector<8x128xf32>
      %30 = arith.addf %27, %29 : vector<8x128xf32>
      %c0_15 = arith.constant 0 : index
      %c0_16 = arith.constant 0 : index
      %31 = vector.load %arg5[%c0_15, %c0_16] : memref<8x128xf32, #tpu.memory_space<vmem>>, vector<8x128xf32>
      tpu.vector_store %arg5[%c0_15, %c0_16], %30 {strides = array<i32>} : memref<8x128xf32, #tpu.memory_space<vmem>>, vector<8x128xf32>,
    } else {
    }
    %c0_i32_10 = arith.constant 0 : i32
    %19 = arith.cmpi eq, %arg1, %c0_i32_10 : i32
    %20 = arith.extui %19 : i1 to i32
    %c0_i32_11 = arith.constant 0 : i32
    %21 = arith.cmpi ne, %20, %c0_i32_11 : i32
    scf.if %21 {
      %c0_12 = arith.constant 0 : index
      %c0_13 = arith.constant 0 : index
      %22 = vector.load %arg5[%c0_12, %c0_13] : memref<8x128xf32, #tpu.memory_space<vmem>>, vector<8x128xf32>
      %c0_14 = arith.constant 0 : index
      %c0_15 = arith.constant 0 : index
      %23 = vector.load %arg4[%c0_14, %c0_15] : memref<8x128xf32, #tpu.memory_space<vmem>>, vector<8x128xf32>
      tpu.vector_store %arg4[%c0_14, %c0_15], %22 {strides = array<i32>} : memref<8x128xf32, #tpu.memory_space<vmem>>, vector<8x128xf32>,
    } else {
    }
    return
  }
  func.func @transform_0(%arg0: i32, %arg1: i32) -> (i32, i32) {
    %c1_i32 = arith.constant 1 : i32
    %0 = arith.muli %arg0, %c1_i32 : i32
    %1 = arith.addi %0, %arg1 : i32
    %c0_i32 = arith.constant 0 : i32
    %2 = arith.minsi %1, %c0_i32 : i32
    %c0_i32_0 = arith.constant 0 : i32
    %c0_i32_1 = arith.constant 0 : i32
    return %2, %c0_i32_0 : i32, i32
  }
  func.func @transform_1(%arg0: i32, %arg1: i32) -> (i32, i32) {
    %c1_i32 = arith.constant 1 : i32
    %0 = arith.muli %arg0, %c1_i32 : i32
    %1 = arith.addi %0, %arg1 : i32
    %c0_i32 = arith.constant 0 : i32
    %2 = arith.minsi %1, %c0_i32 : i32
    %c0_i32_0 = arith.constant 0 : i32
    %c0_i32_1 = arith.constant 0 : i32
    return %2, %c0_i32_0 : i32, i32
  }
  func.func @transform_2(%arg0: i32, %arg1: i32) -> (i32, i32) {
    %c0_i32 = arith.constant 0 : i32
    %c0_i32_0 = arith.constant 0 : i32
    return %arg0, %c0_i32 : i32, i32
  }
}

</mosaic_0001>

<bundles_post_ra>
// kernel: tpu_custom_call.1
= control target key start
LH: loop header
LB: loop body
LE: loop exit
PB: predicated region body
PF: predicated region fallthrough
CT: control target
= control target key end

     0   :  { %7 = vsyncpa [#allocation4], 0  ;;  %s889_s0 = inlined_call_operand.hbm [shape: f32[16,128], index: 0, kind: input, shape index: {}]   ;;  %s890_s1 = inlined_call_operand.hbm [shape: f32[16,128], index: 1, kind: input, shape index: {}]   ;;  %s891_s2 = inlined_call_operand.hbm [shape: f32[16,128], index: 2, kind: output, shape index: {}]  }
   0x1   :  { %9 = vsyncpa [#allocation4 + $0x1], 0 }
   0x2   :  { %10 = vsyncpa [#allocation7], 0 }
   0x3   :  { %12 = vsyncpa [#allocation7 + $0x1], 0 }
   0x4   :  { %13 = vsyncpa [#allocation5], 0 }
   0x5   :  { %15 = vsyncpa [#allocation5 + $0x1], 0  ;;  %s713_s9 = smov 0   ;;  %s715_s10 = smov 0  }
   0x6   :  { %s717_s11 = smov 0   ;;  %s719_s12 = smov 0  }
   0x7   :  { %s721_s13 = smov 0   ;;  %s723_s14 = smov 0  }
   0x8   :  { %s725_s15 = smov 0   ;;  %s727_s16 = smov 0  }
   0x9 LB: > { %s408_s17 = sadd.s32 4294967295, %s691_s16   ;;  %s409_s18 = sadd.s32 4294967294, %s691_s16   ;;  %s691_s16 = sphi %s727_s16, %s21_s16   ;;  %s687_s15 = sphi %s725_s15, %s903_s15   ;;  %s683_s14 = sphi %s723_s14, %s902_s14   ;;  %s679_s13 = sphi %s721_s13, %s879_s13   ;;  %s675_s12 = sphi %s719_s12, %s901_s12   ;;  %s671_s11 = sphi %s717_s11, %s900_s11   ;;  %s667_s10 = sphi %s715_s10, %s899_s10   ;;  %s663_s9 = sphi %s713_s9, %s898_s9  }
   0xa   : > { %s33_s19 = sadd.s32 1, %s687_s15  ;;  %p660_p1 = scmp.ne.s32.totalorder %s679_s13, 0 }
   0xb   : > { %p35_p0 = scmp.ge.s32.totalorder %s33_s19, 2  ;;  %p54_p2 = scmp.eq.s32.totalorder %s691_s16, 0 }
   0xc   : > { %p59_p3 = scmp.ne.s32.totalorder %s679_s13, %s675_s12  ;;  %p60_p5 = scmp.eq.s32.totalorder %s408_s17, 0 }
   0xd   : > { %s905_s19 = smov (%p35_p0, %s33_s19), 0  ;;  %p759_p4 = por %p660_p1, %p54_p2 }
   0xe   : > { %p763_p6 = por %p60_p5, %p59_p3  ;;  %s101_s22 = ssub.s32 %s687_s15, %s905_s19 }
   0xf   : > { %p102_p7 = scmp.eq.s32.totalorder %s101_s22, 0  ;;  %s104_s23 = sadd.s32 1, %s671_s11 }
  0x10   : > { %p114_p8 = scmp.ne.s32.totalorder %s671_s11, %s667_s10  ;;  %p115_p9 = scmp.eq.s32.totalorder %s408_s17, 1 }
  0x11   : > { %s771_s24 = scalar_select %p102_p7, %s671_s11, %s104_s23  }
  0x12   : > { %p120_p10 = scmp.ne.s32.totalorder %s667_s10, %s663_s9  ;;  %p121_p11 = scmp.eq.s32.totalorder %s409_s18, 1 }
  0x13   : > { %p777_p12 = por %p115_p9, %p114_p8  ;;  %p411_p13 = scmp.ge.s32.totalorder %s691_s16, 2 }
  0x14   : > { %p782_p0 = por %p121_p11, %p120_p10  ;;  %p447_p1 = scmp.lt.s32.totalorder %s691_s16, 2 }
  0x15   : > { %s154_s29 = sshll.u32 %s889_s0, 4  ;;  %s693_s30 = smov [#allocation3]   ;;  %s155_s29 = int_to_ptr.hbm [resolvable:$true] %s154_s29 }
  0x16   : > { %s156_s3 = sshll.u32 %s693_s30, 4  ;;  %p792_p2 = pnand %p447_p1, %p759_p4  ;;  %s157_s3 = int_to_ptr.vmem [resolvable:$true] %s156_s3 }
  0x17   : > { %p418_p3 = scmp.ge.s32.totalorder %s691_s16, 1  ;;  %p189_p5 = scmp.lt.s32.totalorder %s691_s16, 3 }
  0x18   : > { %s524_s5 = sshra.s32 %s155_s29, 4  ;;  %p528_p8 = pneg %p792_p2  ;;  %s525_s5 = int_to_ptr.hbm [resolvable:$true] %s524_s5 }
  0x19   : > { %s526_s6 = scalar_lea.hbm %s525_s5, 16  ;;  %s531_s12 = scalar_lea.hbm %s889_s0, 16 }
  0x1a   : > { %p527_p7 = scmp.ne.s32.totalorder %s525_s5, %s526_s6  ;;  %p533_p4 = scmp.lt.s32.totalorder %s531_s12, %s526_s6 }
  0x1c   : > { %p529_p9 = pnand %p528_p8, %p527_p7 }
  0x1e   : > { %p530_p10 = pneg %p529_p9 }
  0x20   : > { %p535_p11 = pnand %p533_p4, %p530_p10 }
  0x22   : > { %538 = shalt.err (!%p535_p11)
}
  0x23   : > { %s694_s17 = smov 128   ;;  %s695_s18 = smov 8  }
  0x24   : > { %439 = dma.hbm_to_vmem [thread:$0]  (!%p792_p2), %s155_s29, 256, %s157_s3, [#allocation4], %s694_s17, %s694_s17, %s695_s18  }
  0x25   : > { %p812_p1 = pnand %p418_p3, %p189_p5  ;;  %s179_s27 = sshll.u32 %s890_s1, 4  ;;  %s180_s27 = int_to_ptr.hbm [resolvable:$true] %s179_s27 }
  0x26   : > { %s696_s28 = smov [#allocation6]   ;;  %s554_s5 = sshra.s32 %s180_s27, 4  ;;  %s555_s5 = int_to_ptr.hbm [resolvable:$true] %s554_s5 }
  0x27   : > { %s181_s30 = sshll.u32 %s696_s28, 4  ;;  %s556_s6 = scalar_lea.hbm %s555_s5, 16  ;;  %s182_s30 = int_to_ptr.vmem [resolvable:$true] %s181_s30 }
  0x28   : > { %p557_p7 = scmp.ne.s32.totalorder %s555_s5, %s556_s6  ;;  %s561_s7 = scalar_lea.hbm %s890_s1, 16 }
  0x29   : > { %p563_p3 = scmp.lt.s32.totalorder %s561_s7, %s556_s6 }
  0x2a   : > { %p559_p9 = pnand %p557_p7, %p528_p8 }
  0x2c   : > { %p560_p10 = pneg %p559_p9 }
  0x2e   : > { %p565_p5 = pnand %p563_p3, %p560_p10 }
  0x30   : > { %568 = shalt.err (!%p565_p5)
}
  0x31   : > { %442 = dma.hbm_to_vmem [thread:$0]  (!%p792_p2), %s180_s27, 256, %s182_s30, [#allocation7], %s694_s17, %s694_s17, %s695_s18  }
  0x32   : > { %193 = sbr.rel (%p812_p1) target bundleno = 109 (0x6d), region = 28  ;;  %s195_s8 = sand.u32 (!%p812_p1), 1, %s679_s13  }
  0x33   : > { %s419_s12 = sshll.u32 (!%p812_p1), %s195_s8, 4  ;;  %s196_s22 = scalar_lea.sflag (!%p812_p1), [#allocation4], %s195_s8 }
  0x34   : > { %s199_s23 = scalar_lea.vmem (!%p812_p1), [#allocation3], %s419_s12 }
  0x37   : > { %649 = dma.done.wait (%p763_p6), %s196_s22, 256  }
  0x38   : > { %651 = vsyncadd (%p763_p6), %s196_s22, 4294967040  ;;  %s206_s28 = scalar_lea.sflag [#allocation7], %s195_s8  ;;  %s209_s5 = scalar_lea.vmem [#allocation6], %s419_s12 }
  0x39   : > { %653 = dma.done.wait (%p763_p6), %s206_s28, 256  }
  0x3a   : > { %655 = vsyncadd (%p763_p6), %s206_s28, 4294967040  ;;  %s233_s4 = sand.u32 1, %s667_s10   ;;  %s422_s17 = sshll.u32 %s683_s14, 4  ;;  %v697_v0 = vmov 0.0   ;;  %v249_v1 = vld [vmem:[%s199_s23] sm:$0xff]  ;;  %v250_v2 = vld [vmem:[%s199_s23 + $0x8] sm:$0xff] }
  0x3b   : > { %s842_s18 = sshll.u32 %s233_s4, 3  ;;  %248 = vst [vmem:[#allocation2] sm:$0xff] %v697_v0  ;;  %s259_s20 = ssub.s32 16, %s422_s17  ;;  %v251_v3 = vld [vmem:[%s209_s5] sm:$0xff]  ;;  %v252_v4 = vld [vmem:[%s209_s5 + $0x8] sm:$0xff] }
  0x3c   : > { %v253_v5 = vsub.f32 %v249_v1, %v251_v3  ;;  %v254_v6 = vsub.f32 %v250_v2, %v252_v4  ;;  %s235_s21 = scalar_lea.vmem [#allocation8], %s842_s18  ;;  %p423_p6 = scmp.lt.s32.totalorder %s259_s20, 16 }
  0x3e   : > { %v255_v7 = vmul.f32 %v253_v5, %v253_v5  ;;  %v256_v8 = vmul.f32 %v254_v6, %v254_v6  ;;  %263 = sbr.rel (%p423_p6) target bundleno = 72 (0x48), region = 44 }
  0x43   : > { %v264_v9 = vld [vmem:[#allocation2] sm:$0xff]  ;;  %v265_v10 = vadd.f32 %v256_v8, %v255_v7 }
  0x45   : > { %v266_v11 = vadd.f32 %v265_v10, %v264_v9 }
  0x47   : > { %267 = vst [vmem:[#allocation2] sm:$0xff] %v266_v11 }
  0x48 PF: > { %p268_p2 = scmp.gt.s32.totalorder %s259_s20, 0 }
  0x4a   : > { %p270_p8 = pnand %p423_p6, %p268_p2 }
  0x4c   : > { %273 = sbr.rel (%p270_p8) target bundleno = 94 (0x5e), region = 48 }
  0x51   : > { %v274_v12 = vlaneseq  ;;  %v277_v13 = vstv %s259_s20  ;;  %v282_v18 = vld [vmem:[#allocation2] sm:$0xff] }
  0x53   : > { %v275_v14 = vshrl.u32 %v274_v12, 7 }
  0x55   : > { %v276_v15 = vadd.s32 8, %v275_v14  ;;  %vm278_vm0 = vcmp.lt.s32.totalorder %v275_v14, %v277_v13 }
  0x56   : > { %v280_v16 = vsel %vm278_vm0, %v255_v7, 0.0 }
  0x57   : > { %vm279_vm1 = vcmp.lt.s32.totalorder %v276_v15, %v277_v13 }
  0x58   : > { %v281_v17 = vsel %vm279_vm1, %v256_v8, 0.0 }
  0x59   : > { %v283_v19 = vadd.f32 %v281_v17, %v280_v16 }
  0x5b   : > { %v284_v20 = vadd.f32 %v283_v19, %v282_v18 }
  0x5d   : > { %285 = vst [vmem:[#allocation2] sm:$0xff] %v284_v20 }
  0x5e PF: > { %s425_s27 = sshll.u32 %s683_s14, 3  ;;  %s304_s3 = sshll.u32 %s235_s21, 4  ;;  %s305_s3 = int_to_ptr.vmem [resolvable:$true] %s304_s3 }
  0x5f   : > { %s302_s29 = scalar_lea.hbm %s891_s2, %s425_s27  ;;  %s292_s8 = scalar_lea.sflag [#allocation5], %s233_s4 }
  0x60   : > { %s306_s7 = sshll.u32 %s302_s29, 4  ;;  %s604_s28 = scalar_lea.hbm %s891_s2, 16  ;;  %s307_s7 = int_to_ptr.hbm [resolvable:$true] %s306_s7 }
  0x61   : > { %s598_s12 = sshra.s32 %s307_s7, 4  ;;  %s599_s12 = int_to_ptr.hbm [resolvable:$true] %s598_s12 }
  0x62   : > { %s600_s22 = scalar_lea.hbm %s599_s12, 8  ;;  %p605_p7 = scmp.lt.s32.totalorder %s599_s12, %s891_s2 }
  0x63   : > { %p601_p4 = scmp.ne.s32.totalorder %s599_s12, %s600_s22  ;;  %p606_p9 = scmp.lt.s32.totalorder %s604_s28, %s600_s22 }
  0x64   : > { %v289_v21 = vld [vmem:[#allocation2] sm:$0xff] }
  0x65   : > { %290 = vst [vmem:[%s235_s21] sm:$0xff] %v289_v21  ;;  %p602_p11 = pnand %p601_p4, %p777_p12  ;;  %p607_p10 = por %p606_p9, %p605_p7 }
  0x67   : > { %p603_p1 = pneg %p602_p11 }
  0x69   : > { %p608_p3 = pnand %p607_p10, %p603_p1 }
  0x6b   : > { %611 = shalt.err (!%p608_p3)
}
  0x6c   : > { %434 = dma.vmem_to_hbm [thread:$0]  (%p777_p12), %s305_s3, 128, %s307_s7, %s292_s8  }
  0x6d PF: > { %s318_s4 = sand.u32 1, %s663_s9   ;;  %p444_p5 = pnand %p411_p13, %p782_p0 }
  0x6e   : > { %s319_s18 = scalar_lea.sflag [#allocation5], %s318_s4 }
  0x6f   : > { %p445_p6 = pneg %p444_p5 }
  0x71   : > { %657 = dma.done.wait (%p445_p6), %s319_s18, 128  }
  0x72   : > { %659 = vsyncadd (%p445_p6), %s319_s18, 4294967168  ;;  %s21_s16 = sadd.s32 1, %s691_s16   ;;  %s898_s9 = smov %s667_s10 }
  0x73   : > { %p18_p2 = scmp.ge.s32.totalorder %s21_s16, 4   ;;  %s899_s10 = smov %s671_s11 }
  0x74   : > { %s900_s11 = smov %s771_s24  ;;  %s901_s12 = smov %s679_s13 }
  0x75   : > { %s879_s13 = smov 0   ;;  %s902_s14 = smov %s687_s15 }
  0x76   : > { %s903_s15 = smov %s905_s19  ;;  %20 = sbr.rel (!%p18_p2) target bundleno = 9 (0x9), region = 102 }
  0x7b   :  { %325 = vsyncpa [#allocation4], 1 }
  0x7c   :  { %327 = vsyncpa [#allocation4 + $0x1], 1 }
  0x7d   :  { %328 = vsyncpa [#allocation7], 1 }
  0x7e   :  { %330 = vsyncpa [#allocation7 + $0x1], 1 }
  0x7f   :  { %331 = vsyncpa [#allocation5], 1 }
  0x80   :  { %333 = vsyncpa [#allocation5 + $0x1], 1 }

</bundles_post_ra>
